<compile_context>
chip_gen: v6e
topology: v6e:2x2x1
jax: 0.10.0
libtpu: 0.0.40
codegen_flags: <defaults>
</compile_context>

<pallas_src>
import functools
import math

import jax
import jax.numpy as jnp
from jax import lax
from jax.experimental import pallas as pl
from jax.experimental.pallas import tpu as pltpu


def _cdiv(a, b):
    return -(-a // b)


def _round_up(a, b):
    return _cdiv(a, b) * b


_VMEM_CAP_CACHE = [None]


def _vmem_capacity_bytes():
    if _VMEM_CAP_CACHE[0] is None:
        cap = None
        try:
            info = pltpu.get_tpu_info()
            cap = int(getattr(info, "vmem_capacity_bytes", 0)) or None
        except Exception:
            cap = None
        _VMEM_CAP_CACHE[0] = cap if cap else (64 * 1024 * 1024)  # conservative (v7x)
    return _VMEM_CAP_CACHE[0]


# ----------------------------------------------------------------------------
# Pallas kernel: one (batch, cout-chunk, row-tile) grid step
# ----------------------------------------------------------------------------
def _conv_kernel(*refs, n_d, W, THo, D, SCp, leak, apply_act, h_out):
    # refs (D > 0):  x_ref, halo_ref, w_ref, b_ref, o_ref, win_ref, xk_ref
    # refs (D == 0): x_ref, w_ref, b_ref, o_ref, xk_ref
    if D > 0:
        x_ref, halo_ref, w_ref, b_ref, o_ref, win_ref, xk_ref = refs
    else:
        x_ref, w_ref, b_ref, o_ref, xk_ref = refs
        halo_ref = win_ref = None
    TL = THo * W

    if D > 0:
        # Assemble the halo'd window once (aligned main write, tiny halo append),
        # then stack the n_d tap-shifted views along the contraction axis so the
        # whole tile is a single stacked-K MXU matmul (no repeated accumulator
        # read/modify/write passes).
        win_ref[:, :TL] = x_ref[0]
        win_ref[:, TL:] = halo_ref[0, 0]
        for d in range(n_d):                       # static, <= K iterations
            xk_ref[d * SCp:(d + 1) * SCp, :] = win_ref[:, d * W:d * W + TL]
    else:
        xk_ref[...] = x_ref[0]

    acc = jnp.dot(w_ref[...], xk_ref[...], preferred_element_type=jnp.float32)
    acc = acc + b_ref[...]                         # bias added once after the dot
    if apply_act:
        acc = jnp.where(acc >= 0.0, acc, leak * acc)

    # Zero padded output rows (t >= h_out): the carried activation then doubles as
    # the next layer's zero back-padding (no post-kernel H slice / re-pad copies).
    j = pl.program_id(2)
    lane = lax.broadcasted_iota(jnp.int32, acc.shape, 1)
    acc = jnp.where(lane < (h_out - j * THo) * W, acc, 0.0)
    o_ref[0] = acc.astype(o_ref.dtype)


# ----------------------------------------------------------------------------
# One conv layer: NCHW Conv2d with kernel (K,1), stride (s,1), padding (p,0)
# ----------------------------------------------------------------------------
def conv2d_h_pallas(x, h_true, layer, *, leak, apply_act, out_dtype=jnp.bfloat16):
    """x: (B, Cin_pad, H_phys, W) bf16, rows >= h_true are exact zeros.

    Returns (y, H_out) with y: (B, Cout_pad, H_out_pad, W); rows >= H_out and
    channels >= layer['cout'] are exact zeros and may be carried to the next layer.
    """
    x = x.astype(jnp.bfloat16)
    B, Cin, H_phys, W = x.shape
    assert Cin == layer["cin"], (Cin, layer["cin"])
    s, p, K, n_d = layer["s"], layer["p"], layer["K"], layer["n_d"]
    Cout_p = layer["cout_p"]
    SC = s * Cin
    SCp = layer["scp"]
    Kdim = layer["w"].shape[1]                      # n_d * SCp
    D = n_d - 1
    H_out = (h_true + 2 * p - K) // s + 1
    assert H_out >= 1

    # ---- row-tile / cout-tile sizing: MiB-scale blocks that fit physical VMEM ----
    vmem_cap = _vmem_capacity_bytes()
    base = 128 // math.gcd(W, 128)                  # smallest THo with THo*W % 128 == 0
    target_x = (4 << 20) if vmem_cap >= (96 << 20) else (2 << 20)
    tho_target = max(1, target_x // max(1, SCp * W * 2))
    THo = base * max(1, _cdiv(min(H_out, tho_target), base))

    tco_opts = [c for c in (Cout_p, 256, 128, 64, 32, 16, 8)
                if c <= Cout_p and Cout_p % c == 0]
    TCO = 256 if (Cout_p >= 512 and 256 in tco_opts) else tco_opts[0]

    out_isize = jnp.dtype(out_dtype).itemsize

    def vmem_need(tho, tco):
        tl = tho * W
        need = 2 * SCp * tl * 2                     # x block (double buffered)
        need += 2 * SCp * D * W * 2                 # halo block
        need += 2 * (tco * Kdim * 2 + tco * 4)      # weights + bias (worst case x2)
        need += 2 * tco * tl * out_isize            # output block
        need += SCp * (tl + D * W) * 2              # window scratch
        need += n_d * SCp * tl * 2                  # stacked-K scratch
        need += tco * tl * (4 + out_isize)          # f32 accumulator + cast temp
        return need + (2 << 20)

    budget = int(0.68 * vmem_cap)
    while vmem_need(THo, TCO) > budget and THo > base:
        THo = base * max(1, (THo // base) // 2)
    while vmem_need(THo, TCO) > budget:
        smaller = [c for c in tco_opts if c < TCO]
        if not smaller:
            break
        TCO = smaller[0]

    TL = THo * W
    n_tiles = _cdiv(H_out, THo)
    n_co = Cout_p // TCO
    H_out_pad = n_tiles * THo
    Hq_total = H_out_pad + D
    H_need = s * Hq_total

    # ---- glue: pad rows, stride-phase split; tiny per-tile halo gathered aside ---
    take = min(H_phys, H_need - p)
    xz = jnp.pad(x[:, :, :take, :], ((0, 0), (0, 0), (p, H_need - p - take), (0, 0)))
    xq = (xz.reshape(B, Cin, Hq_total, s, W)
            .transpose(0, 3, 1, 2, 4)               # rows ordered (phase, cin)
            .reshape(B, SC, Hq_total, W))
    if SCp > SC:
        xq = jnp.pad(xq, ((0, 0), (0, SCp - SC), (0, 0), (0, 0)))
    x_main = xq[:, :, :H_out_pad, :].reshape(B, SCp, H_out_pad * W)
    ops = [x_main]
    x_halo = None
    if D > 0:
        hidx = (jnp.arange(n_tiles)[:, None] + 1) * THo + jnp.arange(D)[None, :]
        x_halo = (xq[:, :, hidx, :]                 # (B, SCp, n_tiles, D, W) -- tiny
                  .transpose(0, 2, 1, 3, 4)
                  .reshape(B, n_tiles, SCp, D * W))
        ops.append(x_halo)
    ops += [layer["w"], layer["b"]]

    vmem_limit = int(min(int(0.75 * vmem_cap),
                         max(vmem_need(THo, TCO) + (4 << 20), 32 << 20)))
    cost = pl.CostEstimate(
        flops=2 * B * Cout_p * Kdim * H_out_pad * W,
        transcendentals=0,
        bytes_accessed=(x_main.size * 2
                        + (x_halo.size * 2 if D > 0 else 0)
                        + layer["w"].size * 2 + layer["b"].size * 4
                        + B * Cout_p * H_out_pad * W * out_isize),
    )

    kernel = functools.partial(_conv_kernel, n_d=n_d, W=W, THo=THo, D=D, SCp=SCp,
                               leak=leak, apply_act=apply_act, h_out=H_out)
    scratch = []
    if D > 0:
        scratch.append(pltpu.VMEM((SCp, TL + D * W), jnp.bfloat16))
    scratch.append(pltpu.VMEM((n_d * SCp, TL), jnp.bfloat16))

    def build_and_run(single_buffer_invariants):
        pm = {"pipeline_mode": pl.Buffered(1)} if single_buffer_invariants else {}
        in_specs = [pl.BlockSpec((1, SCp, TL), lambda b, c, j: (b, 0, j))]
        if D > 0:
            in_specs.append(
                pl.BlockSpec((1, 1, SCp, D * W), lambda b, c, j: (b, j, 0, 0)))
        in_specs.append(pl.BlockSpec((TCO, Kdim), lambda b, c, j: (c, 0), **pm))
        in_specs.append(pl.BlockSpec((TCO, 1), lambda b, c, j: (c, 0), **pm))
        return pl.pallas_call(
            kernel,
            out_shape=jax.ShapeDtypeStruct((B, Cout_p, n_tiles * TL), out_dtype),
            grid=(B, n_co, n_tiles),
            in_specs=in_specs,
            out_specs=pl.BlockSpec((1, TCO, TL), lambda b, c, j: (b, c, j)),
            scratch_shapes=scratch,
            compiler_params=pltpu.CompilerParams(
                dimension_semantics=("parallel", "parallel", "parallel"),
                vmem_limit_bytes=vmem_limit,
            ),
            cost_estimate=cost,
        )(*ops)

    try:
        out = build_and_run(hasattr(pl, "Buffered"))
    except Exception:
        out = build_and_run(False)   # fallback: default double-buffered invariants

    return out.reshape(B, Cout_p, H_out_pad, W), H_out


# ----------------------------------------------------------------------------
# Parameter construction (deterministic, weight_norm folded explicitly)
# ----------------------------------------------------------------------------
def _weight_norm(v, g):
    norm = jnp.sqrt(jnp.sum(v * v, axis=(1, 2, 3), keepdims=True))
    return g * v / norm


def init_mpd_params(key, kernel_size, channels):
    params = {"convs": [], "out_conv": None}
    layer_defs = list(zip(channels, channels[1:])) + [(channels[-1], channels[-1])]
    for (cin, cout) in layer_defs:
        key, kv, kb = jax.random.split(key, 3)
        v = 0.1 * jax.random.normal(kv, (cout, cin, kernel_size, 1), jnp.float32)
        g = jnp.sqrt(jnp.sum(v * v, axis=(1, 2, 3), keepdims=True))
        w = _weight_norm(v, g)
        b = 0.01 * jax.random.normal(kb, (cout,), jnp.float32)
        params["convs"].append((w, b))
    key, kv, kb = jax.random.split(key, 3)
    v = 0.1 * jax.random.normal(kv, (1, channels[-1], 3, 1), jnp.float32)
    g = jnp.sqrt(jnp.sum(v * v, axis=(1, 2, 3), keepdims=True))
    params["out_conv"] = (_weight_norm(v, g),
                          0.01 * jax.random.normal(kb, (1,), jnp.float32))
    return params


# ----------------------------------------------------------------------------
# One-time weight prepacking (taps grouped by shift, channel/sublane padded)
# ----------------------------------------------------------------------------
def _pack_conv(w, b, *, stride, padding, cin_in):
    Cout, Cin_w, K, Kw = w.shape
    assert Kw == 1
    s = stride
    Cout_p = _round_up(Cout, 8)
    n_d = (K - 1) // s + 1
    SC = s * cin_in
    SCp = _round_up(SC, 8)
    wk = w[:, :, :, 0].astype(jnp.float32)
    if Cin_w < cin_in:                   # zero cols for padded input channels
        wk = jnp.pad(wk, ((0, 0), (0, cin_in - Cin_w), (0, 0)))
    wk = jnp.pad(wk, ((0, Cout_p - Cout), (0, 0), (0, n_d * s - K)))
    wk = (wk.reshape(Cout_p, cin_in, n_d, s)
            .transpose(0, 2, 3, 1)       # (Cout_p, n_d, s, cin) -> (phase, cin) order
            .reshape(Cout_p, n_d, SC))
    if SCp > SC:
        wk = jnp.pad(wk, ((0, 0), (0, 0), (0, SCp - SC)))
    wk = wk.reshape(Cout_p, n_d * SCp).astype(jnp.bfloat16)
    bp = jnp.pad(b.astype(jnp.float32), (0, Cout_p - Cout)).reshape(Cout_p, 1)
    return dict(w=wk, b=bp, cout=Cout, cout_p=Cout_p, cin=cin_in, scp=SCp,
                K=K, s=s, p=padding, n_d=n_d)


def pack_mpd_params(params, *, stride):
    packed = {"convs": [], "out_conv": None}
    cin_in = 1
    n = len(params["convs"])
    for i, (w, b) in enumerate(params["convs"]):
        s = stride if i < n - 1 else 1   # last conv of the stack has stride 1
        layer = _pack_conv(w, b, stride=s, padding=2, cin_in=cin_in)
        packed["convs"].append(layer)
        cin_in = layer["cout_p"]
    w, b = params["out_conv"]
    packed["out_conv"] = _pack_conv(w, b, stride=1, padding=1, cin_in=cin_in)
    return packed


# ----------------------------------------------------------------------------
# MPDBlock forward (mirrors the PyTorch module)
# ----------------------------------------------------------------------------
def mpd_block_forward(packed, x, *, period, relu_leakage):
    fms = []
    x = jnp.squeeze(x)
    if x.ndim == 1:
        x = x[None, :]
    batch_size, audio_len = x.shape
    if audio_len % period != 0:
        pad = period - audio_len % period
        x = jnp.pad(x, ((0, 0), (0, pad)), mode="reflect")
        audio_len = x.shape[-1]
    h = audio_len // period
    x = x.reshape(batch_size, 1, h, period).astype(jnp.bfloat16)

    for layer in packed["convs"]:
        x, h = conv2d_h_pallas(x, h, layer, leak=relu_leakage, apply_act=True,
                               out_dtype=jnp.bfloat16)
        fm = x
        if layer["cout"] != layer["cout_p"]:
            fm = fm[:, :layer["cout"]]
        if fm.shape[2] != h:
            fm = fm[:, :, :h]
        fms.append(fm)                   # bf16; cast to f32 lazily at the loss

    # TODO(synk): the 1-channel out_conv could be fused as an epilogue of the last
    # stack conv's kernel (saves one launch + one activation HBM round trip).
    layer = packed["out_conv"]
    x, h = conv2d_h_pallas(x, h, layer, leak=relu_leakage, apply_act=False,
                           out_dtype=jnp.float32)
    y = x[:, :layer["cout"], :h, :]
    fms.append(y)
    out = y.reshape(y.shape[0], -1)
    return out, fms


# ----------------------------------------------------------------------------
# Pure-JAX reference (lax.conv, matching bf16 rounding points) for verification
# ----------------------------------------------------------------------------
def _ref_conv(x, w, b, stride, padding):
    y = lax.conv_general_dilated(
        x.astype(jnp.bfloat16), w.astype(jnp.bfloat16),
        window_strides=(stride, 1),
        padding=[(padding, padding), (0, 0)],
        dimension_numbers=("NCHW", "OIHW", "NCHW"),
        preferred_element_type=jnp.float32,
    )
    return y + b.reshape(1, -1, 1, 1)


def mpd_block_forward_ref(params, x, *, period, stride, relu_leakage):
    x = jnp.squeeze(x)
    if x.ndim == 1:
        x = x[None, :]
    B, T = x.shape
    if T % period != 0:
        x = jnp.pad(x, ((0, 0), (0, period - T % period)), mode="reflect")
        T = x.shape[-1]
    x = x.reshape(B, 1, T // period, period)
    n_convs = len(params["convs"])
    for i, (w, b) in enumerate(params["convs"]):
        s = stride if i < n_convs - 1 else 1
        y = _ref_conv(x, w, b, s, 2)
        y = jnp.where(y >= 0, y, relu_leakage * y)
        x = y.astype(jnp.bfloat16)       # match kernel's bf16 activations
    w, b = params["out_conv"]
    y = _ref_conv(x, w, b, 1, 1)
    return y.reshape(y.shape[0], -1)


if __name__ == "__main__":
    key = jax.random.PRNGKey(0)
    period = 4
    kernel_size = 5
    stride = 3
    channels = [1, 4, 8]
    relu_leakage = 0.1
    B, T = 2, 126  # not divisible by period -> exercises reflect padding

    kp, kx = jax.random.split(key)
    params = init_mpd_params(kp, kernel_size, channels)
    packed = pack_mpd_params(params, stride=stride)   # prepack weights once
    x = jax.random.normal(kx, (B, 1, T), dtype=jnp.float32)

    out, fms = mpd_block_forward(
        packed, x, period=period, relu_leakage=relu_leakage
    )
    jax.block_until_ready(out)
    for fm in fms:
        jax.block_until_ready(fm)

    out_ref = mpd_block_forward_ref(
        params, x, period=period, stride=stride, relu_leakage=relu_leakage
    )
    assert out.shape == out_ref.shape, (out.shape, out_ref.shape)
    err = float(jnp.max(jnp.abs(out - out_ref)))
    assert jnp.allclose(out, out_ref, atol=5e-3, rtol=5e-3), err
    print("KERNEL_OK")
</pallas_src>

<mosaic_0001>
module attributes {stable_mosaic.version = 11 : i64} {
  func.func @_conv_kernel(%arg0: i32, %arg1: i32, %arg2: i32, %arg3: memref<1x8x128xbf16, #tpu.memory_space<vmem>>, %arg4: memref<1x1x8x4xbf16, #tpu.memory_space<vmem>>, %arg5: memref<8x16xbf16, #tpu.memory_space<vmem>>, %arg6: memref<8x1xf32, #tpu.memory_space<vmem>>, %arg7: memref<1x8x128xbf16, #tpu.memory_space<vmem>>, %arg8: memref<8x132xbf16, #tpu.memory_space<vmem>>, %arg9: memref<16x128xbf16, #tpu.memory_space<vmem>>) attributes {dimension_semantics = [#tpu.dimension_semantics<parallel>, #tpu.dimension_semantics<parallel>, #tpu.dimension_semantics<parallel>], iteration_bounds = array<i64: 2, 1, 1>, scalar_prefetch = 0 : i64, scratch_operands = 2 : i64, tpu.core_type = #tpu.core_type<tc>, window_params = [{transform_indices = @transform_0, window_bounds = array<i64: 1, 8, 128>}, {transform_indices = @transform_1, window_bounds = array<i64: 1, 1, 8, 4>}, {pipeline_mode = #tpu.pipeline_mode<synchronous>, transform_indices = @transform_2, window_bounds = array<i64: 8, 16>}, {pipeline_mode = #tpu.pipeline_mode<synchronous>, transform_indices = @transform_3, window_bounds = array<i64: 8, 1>}, {transform_indices = @transform_4, window_bounds = array<i64: 1, 8, 128>}]} {
    %c0 = arith.constant 0 : index
    %c0_0 = arith.constant 0 : index
    %c0_1 = arith.constant 0 : index
    %0 = vector.load %arg3[%c0, %c0_0, %c0_1] : memref<1x8x128xbf16, #tpu.memory_space<vmem>>, vector<1x8x128xbf16>
    %1 = vector.shape_cast %0 : vector<1x8x128xbf16> to vector<8x128xbf16>
    %c0_2 = arith.constant 0 : index
    %c0_3 = arith.constant 0 : index
    %2 = vector.load %arg8[%c0_2, %c0_3] : memref<8x132xbf16, #tpu.memory_space<vmem>>, vector<8x128xbf16>
    tpu.vector_store %arg8[%c0_2, %c0_3], %1 {strides = array<i32>} : memref<8x132xbf16, #tpu.memory_space<vmem>>, vector<8x128xbf16>,
    %c0_4 = arith.constant 0 : index
    %c0_5 = arith.constant 0 : index
    %c0_6 = arith.constant 0 : index
    %c0_7 = arith.constant 0 : index
    %3 = vector.load %arg4[%c0_4, %c0_5, %c0_6, %c0_7] : memref<1x1x8x4xbf16, #tpu.memory_space<vmem>>, vector<1x1x8x4xbf16>
    %4 = vector.shape_cast %3 : vector<1x1x8x4xbf16> to vector<8x4xbf16>
    %c0_8 = arith.constant 0 : index
    %c128 = arith.constant 128 : index
    %5 = vector.load %arg8[%c0_8, %c128] : memref<8x132xbf16, #tpu.memory_space<vmem>>, vector<8x4xbf16>
    tpu.vector_store %arg8[%c0_8, %c128], %4 {strides = array<i32>} : memref<8x132xbf16, #tpu.memory_space<vmem>>, vector<8x4xbf16>,
    %c0_9 = arith.constant 0 : index
    %c0_10 = arith.constant 0 : index
    %6 = vector.load %arg8[%c0_9, %c0_10] : memref<8x132xbf16, #tpu.memory_space<vmem>>, vector<8x128xbf16>
    %c0_11 = arith.constant 0 : index
    %c0_12 = arith.constant 0 : index
    %7 = vector.load %arg9[%c0_11, %c0_12] : memref<16x128xbf16, #tpu.memory_space<vmem>>, vector<8x128xbf16>
    tpu.vector_store %arg9[%c0_11, %c0_12], %6 {strides = array<i32>} : memref<16x128xbf16, #tpu.memory_space<vmem>>, vector<8x128xbf16>,
    %c0_13 = arith.constant 0 : index
    %c4 = arith.constant 4 : index
    %8 = vector.load %arg8[%c0_13, %c4] : memref<8x132xbf16, #tpu.memory_space<vmem>>, vector<8x128xbf16>
    %c8 = arith.constant 8 : index
    %c0_14 = arith.constant 0 : index
    %9 = vector.load %arg9[%c8, %c0_14] : memref<16x128xbf16, #tpu.memory_space<vmem>>, vector<8x128xbf16>
    tpu.vector_store %arg9[%c8, %c0_14], %8 {strides = array<i32>} : memref<16x128xbf16, #tpu.memory_space<vmem>>, vector<8x128xbf16>,
    %c0_15 = arith.constant 0 : index
    %c0_16 = arith.constant 0 : index
    %10 = vector.load %arg5[%c0_15, %c0_16] : memref<8x16xbf16, #tpu.memory_space<vmem>>, vector<8x16xbf16>
    %c0_17 = arith.constant 0 : index
    %c0_18 = arith.constant 0 : index
    %11 = vector.load %arg9[%c0_17, %c0_18] : memref<16x128xbf16, #tpu.memory_space<vmem>>, vector<16x128xbf16>
    %cst = arith.constant dense<0.000000e+00> : vector<8x128xf32>
    %12 = tpu.matmul %10, %11, %cst {dimension_numbers = #tpu.dot_dimension_numbers<[1], [0], [0], [1], [0, 0, 1, 1], [], []>} : vector<8x16xbf16>, vector<16x128xbf16>, vector<8x128xf32> -> vector<8x128xf32>
    %c0_19 = arith.constant 0 : index
    %c0_20 = arith.constant 0 : index
    %13 = vector.load %arg6[%c0_19, %c0_20] : memref<8x1xf32, #tpu.memory_space<vmem>>, vector<8x1xf32>
    %14 = vector.broadcast %13 : vector<8x1xf32> to vector<8x128xf32>
    %15 = arith.addf %12, %14 : vector<8x128xf32>
    %cst_21 = arith.constant 0.000000e+00 : f32
    %16 = vector.broadcast %cst_21 : f32 to vector<8x128xf32>
    %17 = arith.cmpf oge, %15, %16 : vector<8x128xf32>
    %cst_22 = arith.constant 1.000000e-01 : f32
    %18 = vector.broadcast %cst_22 : f32 to vector<8x128xf32>
    %19 = arith.mulf %18, %15 : vector<8x128xf32>
    %20 = arith.select %17, %15, %19 : vector<8x128xi1>, vector<8x128xf32>
    %21 = tpu.iota {dimensions = array<i32: 1>} : vector<8x128xi32>
    %c32_i32 = arith.constant 32 : i32
    %22 = arith.muli %arg2, %c32_i32 : i32
    %c11_i32 = arith.constant 11 : i32
    %23 = arith.subi %c11_i32, %22 : i32
    %c4_i32 = arith.constant 4 : i32
    %24 = arith.muli %23, %c4_i32 : i32
    %25 = vector.broadcast %24 : i32 to vector<8x128xi32>
    %26 = arith.cmpi slt, %21, %25 : vector<8x128xi32>
    %cst_23 = arith.constant 0.000000e+00 : f32
    %27 = vector.broadcast %cst_23 : f32 to vector<8x128xf32>
    %28 = arith.select %26, %20, %27 : vector<8x128xi1>, vector<8x128xf32>
    %29 = arith.truncf %28 : vector<8x128xf32> to vector<8x128xbf16>
    %c0_24 = arith.constant 0 : index
    %c0_25 = arith.constant 0 : index
    %c0_26 = arith.constant 0 : index
    %30 = vector.load %arg7[%c0_24, %c0_25, %c0_26] : memref<1x8x128xbf16, #tpu.memory_space<vmem>>, vector<1x8x128xbf16>
    %31 = vector.shape_cast %30 : vector<1x8x128xbf16> to vector<8x128xbf16>
    %32 = vector.shape_cast %29 : vector<8x128xbf16> to vector<1x8x128xbf16>
    tpu.vector_store %arg7[%c0_24, %c0_25, %c0_26], %32 {strides = array<i32>} : memref<1x8x128xbf16, #tpu.memory_space<vmem>>, vector<1x8x128xbf16>,
    return
  }
  func.func @transform_0(%arg0: i32, %arg1: i32, %arg2: i32) -> (i32, i32, i32) {
    %c0_i32 = arith.constant 0 : i32
    %c0_i32_0 = arith.constant 0 : i32
    return %arg0, %c0_i32, %arg2 : i32, i32, i32
  }
  func.func @transform_1(%arg0: i32, %arg1: i32, %arg2: i32) -> (i32, i32, i32, i32) {
    %c0_i32 = arith.constant 0 : i32
    %c0_i32_0 = arith.constant 0 : i32
    %c0_i32_1 = arith.constant 0 : i32
    return %arg0, %arg2, %c0_i32, %c0_i32_0 : i32, i32, i32, i32
  }
  func.func @transform_2(%arg0: i32, %arg1: i32, %arg2: i32) -> (i32, i32) {
    %c0_i32 = arith.constant 0 : i32
    %c0_i32_0 = arith.constant 0 : i32
    return %arg1, %c0_i32 : i32, i32
  }
  func.func @transform_3(%arg0: i32, %arg1: i32, %arg2: i32) -> (i32, i32) {
    %c0_i32 = arith.constant 0 : i32
    %c0_i32_0 = arith.constant 0 : i32
    return %arg1, %c0_i32 : i32, i32
  }
  func.func @transform_4(%arg0: i32, %arg1: i32, %arg2: i32) -> (i32, i32, i32) {
    %c0_i32 = arith.constant 0 : i32
    return %arg0, %arg1, %arg2 : i32, i32, i32
  }
}

module attributes {stable_mosaic.version = 11 : i64} {
  func.func @_conv_kernel(%arg0: i32, %arg1: i32, %arg2: i32, %arg3: memref<1x8x128xbf16, #tpu.memory_space<vmem>>, %arg4: memref<1x1x8x4xbf16, #tpu.memory_space<vmem>>, %arg5: memref<8x16xbf16, #tpu.memory_space<vmem>>, %arg6: memref<8x1xf32, #tpu.memory_space<vmem>>, %arg7: memref<1x8x128xbf16, #tpu.memory_space<vmem>>, %arg8: memref<8x132xbf16, #tpu.memory_space<vmem>>, %arg9: memref<16x128xbf16, #tpu.memory_space<vmem>>) attributes {dimension_semantics = [#tpu.dimension_semantics<parallel>, #tpu.dimension_semantics<parallel>, #tpu.dimension_semantics<parallel>], iteration_bounds = array<i64: 2, 1, 1>, scalar_prefetch = 0 : i64, scratch_operands = 2 : i64, tpu.core_type = #tpu.core_type<tc>, window_params = [{transform_indices = @transform_0, window_bounds = array<i64: 1, 8, 128>}, {transform_indices = @transform_1, window_bounds = array<i64: 1, 1, 8, 4>}, {transform_indices = @transform_2, window_bounds = array<i64: 8, 16>}, {transform_indices = @transform_3, window_bounds = array<i64: 8, 1>}, {transform_indices = @transform_4, window_bounds = array<i64: 1, 8, 128>}]} {
    %c0 = arith.constant 0 : index
    %c0_0 = arith.constant 0 : index
    %c0_1 = arith.constant 0 : index
    %0 = vector.load %arg3[%c0, %c0_0, %c0_1] : memref<1x8x128xbf16, #tpu.memory_space<vmem>>, vector<1x8x128xbf16>
    %1 = vector.shape_cast %0 : vector<1x8x128xbf16> to vector<8x128xbf16>
    %c0_2 = arith.constant 0 : index
    %c0_3 = arith.constant 0 : index
    %2 = vector.load %arg8[%c0_2, %c0_3] : memref<8x132xbf16, #tpu.memory_space<vmem>>, vector<8x128xbf16>
    tpu.vector_store %arg8[%c0_2, %c0_3], %1 {strides = array<i32>} : memref<8x132xbf16, #tpu.memory_space<vmem>>, vector<8x128xbf16>,
    %c0_4 = arith.constant 0 : index
    %c0_5 = arith.constant 0 : index
    %c0_6 = arith.constant 0 : index
    %c0_7 = arith.constant 0 : index
    %3 = vector.load %arg4[%c0_4, %c0_5, %c0_6, %c0_7] : memref<1x1x8x4xbf16, #tpu.memory_space<vmem>>, vector<1x1x8x4xbf16>
    %4 = vector.shape_cast %3 : vector<1x1x8x4xbf16> to vector<8x4xbf16>
    %c0_8 = arith.constant 0 : index
    %c128 = arith.constant 128 : index
    %5 = vector.load %arg8[%c0_8, %c128] : memref<8x132xbf16, #tpu.memory_space<vmem>>, vector<8x4xbf16>
    tpu.vector_store %arg8[%c0_8, %c128], %4 {strides = array<i32>} : memref<8x132xbf16, #tpu.memory_space<vmem>>, vector<8x4xbf16>,
    %c0_9 = arith.constant 0 : index
    %c0_10 = arith.constant 0 : index
    %6 = vector.load %arg8[%c0_9, %c0_10] : memref<8x132xbf16, #tpu.memory_space<vmem>>, vector<8x128xbf16>
    %c0_11 = arith.constant 0 : index
    %c0_12 = arith.constant 0 : index
    %7 = vector.load %arg9[%c0_11, %c0_12] : memref<16x128xbf16, #tpu.memory_space<vmem>>, vector<8x128xbf16>
    tpu.vector_store %arg9[%c0_11, %c0_12], %6 {strides = array<i32>} : memref<16x128xbf16, #tpu.memory_space<vmem>>, vector<8x128xbf16>,
    %c0_13 = arith.constant 0 : index
    %c4 = arith.constant 4 : index
    %8 = vector.load %arg8[%c0_13, %c4] : memref<8x132xbf16, #tpu.memory_space<vmem>>, vector<8x128xbf16>
    %c8 = arith.constant 8 : index
    %c0_14 = arith.constant 0 : index
    %9 = vector.load %arg9[%c8, %c0_14] : memref<16x128xbf16, #tpu.memory_space<vmem>>, vector<8x128xbf16>
    tpu.vector_store %arg9[%c8, %c0_14], %8 {strides = array<i32>} : memref<16x128xbf16, #tpu.memory_space<vmem>>, vector<8x128xbf16>,
    %c0_15 = arith.constant 0 : index
    %c0_16 = arith.constant 0 : index
    %10 = vector.load %arg5[%c0_15, %c0_16] : memref<8x16xbf16, #tpu.memory_space<vmem>>, vector<8x16xbf16>
    %c0_17 = arith.constant 0 : index
    %c0_18 = arith.constant 0 : index
    %11 = vector.load %arg9[%c0_17, %c0_18] : memref<16x128xbf16, #tpu.memory_space<vmem>>, vector<16x128xbf16>
    %cst = arith.constant dense<0.000000e+00> : vector<8x128xf32>
    %12 = tpu.matmul %10, %11, %cst {dimension_numbers = #tpu.dot_dimension_numbers<[1], [0], [0], [1], [0, 0, 1, 1], [], []>} : vector<8x16xbf16>, vector<16x128xbf16>, vector<8x128xf32> -> vector<8x128xf32>
    %c0_19 = arith.constant 0 : index
    %c0_20 = arith.constant 0 : index
    %13 = vector.load %arg6[%c0_19, %c0_20] : memref<8x1xf32, #tpu.memory_space<vmem>>, vector<8x1xf32>
    %14 = vector.broadcast %13 : vector<8x1xf32> to vector<8x128xf32>
    %15 = arith.addf %12, %14 : vector<8x128xf32>
    %cst_21 = arith.constant 0.000000e+00 : f32
    %16 = vector.broadcast %cst_21 : f32 to vector<8x128xf32>
    %17 = arith.cmpf oge, %15, %16 : vector<8x128xf32>
    %cst_22 = arith.constant 1.000000e-01 : f32
    %18 = vector.broadcast %cst_22 : f32 to vector<8x128xf32>
    %19 = arith.mulf %18, %15 : vector<8x128xf32>
    %20 = arith.select %17, %15, %19 : vector<8x128xi1>, vector<8x128xf32>
    %21 = tpu.iota {dimensions = array<i32: 1>} : vector<8x128xi32>
    %c32_i32 = arith.constant 32 : i32
    %22 = arith.muli %arg2, %c32_i32 : i32
    %c11_i32 = arith.constant 11 : i32
    %23 = arith.subi %c11_i32, %22 : i32
    %c4_i32 = arith.constant 4 : i32
    %24 = arith.muli %23, %c4_i32 : i32
    %25 = vector.broadcast %24 : i32 to vector<8x128xi32>
    %26 = arith.cmpi slt, %21, %25 : vector<8x128xi32>
    %cst_23 = arith.constant 0.000000e+00 : f32
    %27 = vector.broadcast %cst_23 : f32 to vector<8x128xf32>
    %28 = arith.select %26, %20, %27 : vector<8x128xi1>, vector<8x128xf32>
    %29 = arith.truncf %28 : vector<8x128xf32> to vector<8x128xbf16>
    %c0_24 = arith.constant 0 : index
    %c0_25 = arith.constant 0 : index
    %c0_26 = arith.constant 0 : index
    %30 = vector.load %arg7[%c0_24, %c0_25, %c0_26] : memref<1x8x128xbf16, #tpu.memory_space<vmem>>, vector<1x8x128xbf16>
    %31 = vector.shape_cast %30 : vector<1x8x128xbf16> to vector<8x128xbf16>
    %32 = vector.shape_cast %29 : vector<8x128xbf16> to vector<1x8x128xbf16>
    tpu.vector_store %arg7[%c0_24, %c0_25, %c0_26], %32 {strides = array<i32>} : memref<1x8x128xbf16, #tpu.memory_space<vmem>>, vector<1x8x128xbf16>,
    return
  }
  func.func @transform_0(%arg0: i32, %arg1: i32, %arg2: i32) -> (i32, i32, i32) {
    %c0_i32 = arith.constant 0 : i32
    %c0_i32_0 = arith.constant 0 : i32
    return %arg0, %c0_i32, %arg2 : i32, i32, i32
  }
  func.func @transform_1(%arg0: i32, %arg1: i32, %arg2: i32) -> (i32, i32, i32, i32) {
    %c0_i32 = arith.constant 0 : i32
    %c0_i32_0 = arith.constant 0 : i32
    %c0_i32_1 = arith.constant 0 : i32
    return %arg0, %arg2, %c0_i32, %c0_i32_0 : i32, i32, i32, i32
  }
  func.func @transform_2(%arg0: i32, %arg1: i32, %arg2: i32) -> (i32, i32) {
    %c0_i32 = arith.constant 0 : i32
    %c0_i32_0 = arith.constant 0 : i32
    return %arg1, %c0_i32 : i32, i32
  }
  func.func @transform_3(%arg0: i32, %arg1: i32, %arg2: i32) -> (i32, i32) {
    %c0_i32 = arith.constant 0 : i32
    %c0_i32_0 = arith.constant 0 : i32
    return %arg1, %c0_i32 : i32, i32
  }
  func.func @transform_4(%arg0: i32, %arg1: i32, %arg2: i32) -> (i32, i32, i32) {
    %c0_i32 = arith.constant 0 : i32
    return %arg0, %arg1, %arg2 : i32, i32, i32
  }
}

</mosaic_0001>

<bundles_post_ra>
// kernel: tpu_custom_call.1
= control target key start
LH: loop header
LB: loop body
LE: loop exit
PB: predicated region body
PF: predicated region fallthrough
CT: control target
= control target key end

     0   :  { %9 = vsyncpa [#allocation5], 0  ;;  %s815_s0 = inlined_call_operand.vmem [shape: bf16[2,8,128], index: 0, kind: input, shape index: {}]   ;;  %s816_s1 = inlined_call_operand.vmem [shape: bf16[2,1,8,4], index: 1, kind: input, shape index: {}]   ;;  %s817_s2 = inlined_call_operand.vmem [shape: bf16[8,16], index: 2, kind: input, shape index: {}]   ;;  %s818_s3 = inlined_call_operand.vmem [shape: f32[8,1], index: 3, kind: input, shape index: {}]   ;;  %s819_s4 = inlined_call_operand.hbm [shape: bf16[2,8,128], index: 4, kind: output, shape index: {}]  }
   0x1   :  { %11 = vsyncpa [#allocation5 + $0x1], 0  ;;  %s707_s15 = smov 0   ;;  %s709_s16 = smov 0  }
   0x2   :  { %s711_s17 = smov 0   ;;  %s713_s18 = smov 0  }
   0x3   :  { %s715_s19 = smov 0   ;;  %s717_s20 = smov 0  }
   0x4 LB: > { %s514_s21 = sadd.s32 4294967295, %s675_s20   ;;  %s515_s22 = sadd.s32 4294967294, %s675_s20   ;;  %s675_s20 = sphi %s717_s20, %s17_s20   ;;  %s671_s19 = sphi %s715_s19, %s826_s19   ;;  %s667_s18 = sphi %s713_s18, %s825_s18   ;;  %s663_s17 = sphi %s711_s17, %s824_s17   ;;  %s659_s16 = sphi %s709_s16, %s823_s16   ;;  %s655_s15 = sphi %s707_s15, %s822_s15  }
   0x5   : > { %s36_s23 = sadd.s32 1, %s671_s19  ;;  %s155_s24 = sadd.s32 1, %s663_s17 }
   0x6   : > { %p38_p0 = scmp.ge.s32.totalorder %s36_s23, 2  ;;  %p165_p1 = scmp.ne.s32.totalorder %s663_s17, %s659_s16 }
   0x7   : > { %p166_p2 = scmp.eq.s32.totalorder %s514_s21, 1  ;;  %p171_p3 = scmp.ne.s32.totalorder %s659_s16, %s655_s15 }
   0x8   : > { %s828_s23 = smov (%p38_p0, %s36_s23), 0  ;;  %p172_p5 = scmp.eq.s32.totalorder %s515_s22, 1 }
   0x9   : > { %p747_p4 = por %p166_p2, %p165_p1  ;;  %s148_s26 = ssub.s32 %s671_s19, %s828_s23 }
   0xa   : > { %p520_p6 = scmp.ge.s32.totalorder %s675_s20, 1  ;;  %p153_p7 = scmp.eq.s32.totalorder %s148_s26, 0 }
   0xb   : > { %p754_p8 = por %p172_p5, %p171_p3  ;;  %p224_p9 = scmp.lt.s32.totalorder %s675_s20, 3 }
   0xc   : > { %s760_s28 = scalar_select %p153_p7, %s663_s17, %s155_s24  }
   0xd   : > { %p225_p10 = pnand %p520_p6, %p224_p9 }
   0xe   : > { %p267_p11 = scmp.lt.s32.totalorder (!%p225_p10), %s667_s18, 1  ;;  %s678_s11 = smov (!%p225_p10), 124  }
   0xf   : > { %228 = sbr.rel (%p225_p10) target bundleno = 377 (0x179), region = 36  ;;  %s264_s22 = sand.u32 (!%p225_p10), 1, %s659_s16  }
  0x10   : > { %s521_s24 = sshll.u32 (!%p225_p10), %s264_s22, 2  ;;  %s527_s26 = sshll.u32 (!%p225_p10), %s667_s18, 6 }
  0x11   : > { %s379_s8 = scalar_lea.sflag (!%p225_p10), [#allocation5], %s264_s22 }
  0x14   : > { %s268_s29 = scalar_select %p267_p11, %s667_s18, 1  ;;  %vm293_vm0 = vcmask 27648   ;;  %v677_v2 = vmov 0.0   ;;  %vm679_vm1 = vmmov 0   ;;  %v309_v5 = vld [vmem:[%s818_s3] sm:$0xff]  ;;  %v680_v6 = vmov 0  }
  0x15   : > { %532 = vmatprep.subr.bf16.mxu0 %v677_v2  ;;  %534 = vmatprep.mubr.msk.bf16.mxu0 %vm679_vm1, %v677_v2  ;;  %vm302_vm2 = vcmask 1014784   ;;  %v306_v11 = vld [vmem:[%s817_s2] sm:$0xf]  ;;  %vm321_vm3 = vcmask 130048   ;;  %v368_v12 = vlaneseq }
  0x16   : > { %s522_s30 = sshll.u32 %s268_s29, 2  ;;  %597 = vset.pattern.permute.xlu0 %v680_v6  ;;  %s266_s29 = scalar_lea.vmem [#allocation4], %s521_s24 }
  0x17   : > { %s273_s7 = scalar_lea.vmem %s815_s0, %s522_s30  ;;  %s280_s10 = scalar_lea.vmem %s816_s1, %s522_s30  ;;  %v369_v14 = vand.u32 127, %v368_v12 }
  0x18   : > { %v290_v0 = vld [vmem:[%s273_s7] sm:$0xf]  ;;  %s394_s30 = sshll.u32 %s266_s29, 4  ;;  %s392_s7 = scalar_lea.hbm %s819_s4, %s527_s26  ;;  %s395_s30 = int_to_ptr.vmem [resolvable:$true] %s394_s30 }
  0x19   : > { %v292_v1 = vld [vmem:[%s280_s10] sm:$0xf]  ;;  %291 = vst [vmem:[#allocation2] sm:$0xf] %v290_v0  ;;  %vm374_vm5 = vcmp.lt.s32.totalorder %v369_v14, 44  ;;  %s599_s9 = scalar_lea.vmem %s395_s30, 64 }
  0x1a   : > { %294 = vst.msk [vmem:[#allocation2 + $0x4] sm:$0xf] %vm293_vm0, %v292_v1  ;;  %p600_p12 = scmp.ne.s32.totalorder %s395_s30, %s599_s9  ;;  %s681_s10 = smov [#allocation4]  }
  0x1b   : > { %s603_s18 = sshll.u32 %s681_s10, 4  ;;  %s604_s18 = int_to_ptr.vmem [resolvable:$false] %s603_s18 }
  0x1c   : > { %p601_p13 = pnand %p600_p12, %p747_p4  ;;  %p606_p1 = scmp.lt.s32.totalorder %s395_s30, %s604_s18 }
  0x1e   : > { %p602_p0 = pneg %p601_p13 }
  0x20   : > { %v295_v4 = vld [vmem:[#allocation2] sm:$0xf] }
  0x21   : > { %v297_v3 = vld [vmem:[#allocation2] sm:$0xff]  ;;  %296 = vst [vmem:[#allocation3] sm:$0xf] %v295_v4 }
  0x22   : > { %299 = vrot.lane.b32.xlu0 %v297_v3, %s678_s11  ;;  %s605_s11 = scalar_lea.vmem %s604_s18, 128 }
  0x23   : > { %p607_p2 = scmp.lt.s32.totalorder %s605_s11, %s599_s9 }
  0x25   : > { %p608_p3 = por %p607_p2, %p606_p1 }
  0x26   : > { %312 = vperm.xlu0 %597, %v309_v5  }
  0x27   : > { %p609_p5 = pnand %p608_p3, %p602_p0 }
  0x94   : > { %v300_v7 = vpop.permute.xlu0 %299 }
  0x95   : > { %v301_v8 = vrot.slane %v300_v7, 4 }
  0x97   : > { %v303_v9 = vsel %vm302_vm2, %v300_v7, %v301_v8 }
  0x98   : > { %305 = vst [vmem:[#allocation3 + $0x4] sm:$0xf] %v303_v9 }
  0x9f   : > { %v598_v10 = vld [vmem:[#allocation3] sm:$0xff]  }
  0xa0   : > { %533 = vmatpush3.bf16.msra.mxu0 %v598_v10 }
  0xa1   : > { %v313_v13 = vpop.permute.xlu0 %312 }
  0xa3   : > { %535 = vmatmul.mubr.msk.bf16.vlgmr.msra.gmra.mxu0 %vm321_vm3, %v306_v11 }
 0x163   : > { %v359_v15 = vpop.f32.mrf.mxu0 }
 0x164   : > { %v360_v16 = vadd.f32 %v359_v15, %v313_v13 }
 0x165   : > { %v536_v17 = vpop.f32.mrf.mxu0 }
 0x166   : > { %vm365_vm4 = vcmp.ge.f32.partialorder %v360_v16, 0.0  ;;  %v366_v18 = vmul.f32 0.1, %v360_v16 }
 0x167   : > { %v362_v19 = vpop.f32.mrf.mxu0 }
 0x168   : > { %v367_v20 = vsel %vm365_vm4, %v360_v16, %v366_v18 }
 0x169   : > { %v537_v21 = vpop.f32.mrf.mxu0  ;;  %v375_v22 = vsel %vm374_vm5, %v367_v20, 0.0 }
 0x16a   : > { %v376_v23 = vpack.c.bf16 %v375_v22, %v375_v22 }
 0x16c   : > { %377 = vst [vmem:[%s266_s29] sm:$0xf] %v376_v23 }
 0x16d   : > { %612 = shalt.err (!%p609_p5)
}
 0x16e   : > { %s613_s12 = scalar_lea.hbm %s392_s7, 64  ;;  %s617_s21 = scalar_lea.hbm %s819_s4, 128 }
 0x16f   : > { %p614_p6 = scmp.ne.s32.totalorder %s392_s7, %s613_s12  ;;  %p618_p10 = scmp.lt.s32.totalorder %s392_s7, %s819_s4 }
 0x170   : > { %p619_p11 = scmp.lt.s32.totalorder %s617_s21, %s613_s12 }
 0x171   : > { %p615_p7 = pnand %p614_p6, %p747_p4 }
 0x172   : > { %p620_p12 = por %p619_p11, %p618_p10 }
 0x173   : > { %p616_p9 = pneg %p615_p7 }
 0x175   : > { %p621_p13 = pnand %p620_p12, %p616_p9 }
 0x177   : > { %624 = shalt.err (!%p621_p13)
}
 0x178   : > { %538 = dma.vmem_to_hbm [thread:$0]  (%p747_p4), %s395_s30, 64, %s392_s7, %s379_s8  }
 0x179 PF: > { %p544_p0 = scmp.ge.s32.totalorder %s675_s20, 2  ;;  %s406_s26 = sand.u32 1, %s655_s15  }
 0x17a   : > { %s407_s29 = scalar_lea.sflag [#allocation5], %s406_s26 }
 0x17b   : > { %p541_p1 = pnand %p544_p0, %p754_p8 }
 0x17d   : > { %p542_p2 = pneg %p541_p1 }
 0x17f   : > { %650 = dma.done.wait (%p542_p2), %s407_s29, 64  }
 0x180   : > { %652 = vsyncadd (%p542_p2), %s407_s29, 4294967232  ;;  %s17_s20 = sadd.s32 1, %s675_s20   ;;  %s822_s15 = smov %s659_s16 }
 0x181   : > { %p14_p3 = scmp.ge.s32.totalorder %s17_s20, 4   ;;  %s823_s16 = smov %s663_s17 }
 0x182   : > { %s824_s17 = smov %s760_s28  ;;  %s825_s18 = smov %s671_s19 }
 0x183   : > { %s826_s19 = smov %s828_s23  ;;  %16 = sbr.rel (!%p14_p3) target bundleno = 4 (0x4), region = 80 }
 0x188   :  { %412 = vsyncpa [#allocation5], 1 }
 0x189   :  { %414 = vsyncpa [#allocation5 + $0x1], 1 }

// kernel: tpu_custom_call.1
= control target key start
LH: loop header
LB: loop body
LE: loop exit
PB: predicated region body
PF: predicated region fallthrough
CT: control target
= control target key end

     0   :  { %9 = vsyncpa [#allocation5], 0  ;;  %s815_s0 = inlined_call_operand.vmem [shape: bf16[2,8,128], index: 0, kind: input, shape index: {}]   ;;  %s816_s1 = inlined_call_operand.vmem [shape: bf16[2,1,8,4], index: 1, kind: input, shape index: {}]   ;;  %s817_s2 = inlined_call_operand.vmem [shape: bf16[8,16], index: 2, kind: input, shape index: {}]   ;;  %s818_s3 = inlined_call_operand.vmem [shape: f32[8,1], index: 3, kind: input, shape index: {}]   ;;  %s819_s4 = inlined_call_operand.hbm [shape: bf16[2,8,128], index: 4, kind: output, shape index: {}]  }
   0x1   :  { %11 = vsyncpa [#allocation5 + $0x1], 0  ;;  %s707_s15 = smov 0   ;;  %s709_s16 = smov 0  }
   0x2   :  { %s711_s17 = smov 0   ;;  %s713_s18 = smov 0  }
   0x3   :  { %s715_s19 = smov 0   ;;  %s717_s20 = smov 0  }
   0x4 LB: > { %s514_s21 = sadd.s32 4294967295, %s675_s20   ;;  %s515_s22 = sadd.s32 4294967294, %s675_s20   ;;  %s675_s20 = sphi %s717_s20, %s17_s20   ;;  %s671_s19 = sphi %s715_s19, %s826_s19   ;;  %s667_s18 = sphi %s713_s18, %s825_s18   ;;  %s663_s17 = sphi %s711_s17, %s824_s17   ;;  %s659_s16 = sphi %s709_s16, %s823_s16   ;;  %s655_s15 = sphi %s707_s15, %s822_s15  }
   0x5   : > { %s36_s23 = sadd.s32 1, %s671_s19  ;;  %s155_s24 = sadd.s32 1, %s663_s17 }
   0x6   : > { %p38_p0 = scmp.ge.s32.totalorder %s36_s23, 2  ;;  %p165_p1 = scmp.ne.s32.totalorder %s663_s17, %s659_s16 }
   0x7   : > { %p166_p2 = scmp.eq.s32.totalorder %s514_s21, 1  ;;  %p171_p3 = scmp.ne.s32.totalorder %s659_s16, %s655_s15 }
   0x8   : > { %s828_s23 = smov (%p38_p0, %s36_s23), 0  ;;  %p172_p5 = scmp.eq.s32.totalorder %s515_s22, 1 }
   0x9   : > { %p747_p4 = por %p166_p2, %p165_p1  ;;  %s148_s26 = ssub.s32 %s671_s19, %s828_s23 }
   0xa   : > { %p520_p6 = scmp.ge.s32.totalorder %s675_s20, 1  ;;  %p153_p7 = scmp.eq.s32.totalorder %s148_s26, 0 }
   0xb   : > { %p754_p8 = por %p172_p5, %p171_p3  ;;  %p224_p9 = scmp.lt.s32.totalorder %s675_s20, 3 }
   0xc   : > { %s760_s28 = scalar_select %p153_p7, %s663_s17, %s155_s24  }
   0xd   : > { %p225_p10 = pnand %p520_p6, %p224_p9 }
   0xe   : > { %p267_p11 = scmp.lt.s32.totalorder (!%p225_p10), %s667_s18, 1  ;;  %s678_s11 = smov (!%p225_p10), 124  }
   0xf   : > { %228 = sbr.rel (%p225_p10) target bundleno = 377 (0x179), region = 36  ;;  %s264_s22 = sand.u32 (!%p225_p10), 1, %s659_s16  }
  0x10   : > { %s521_s24 = sshll.u32 (!%p225_p10), %s264_s22, 2  ;;  %s527_s26 = sshll.u32 (!%p225_p10), %s667_s18, 6 }
  0x11   : > { %s379_s8 = scalar_lea.sflag (!%p225_p10), [#allocation5], %s264_s22 }
  0x14   : > { %s268_s29 = scalar_select %p267_p11, %s667_s18, 1  ;;  %vm293_vm0 = vcmask 27648   ;;  %v677_v2 = vmov 0.0   ;;  %vm679_vm1 = vmmov 0   ;;  %v309_v5 = vld [vmem:[%s818_s3] sm:$0xff]  ;;  %v680_v6 = vmov 0  }
  0x15   : > { %532 = vmatprep.subr.bf16.mxu0 %v677_v2  ;;  %534 = vmatprep.mubr.msk.bf16.mxu0 %vm679_vm1, %v677_v2  ;;  %vm302_vm2 = vcmask 1014784   ;;  %v306_v11 = vld [vmem:[%s817_s2] sm:$0xf]  ;;  %vm321_vm3 = vcmask 130048   ;;  %v368_v12 = vlaneseq }
  0x16   : > { %s522_s30 = sshll.u32 %s268_s29, 2  ;;  %597 = vset.pattern.permute.xlu0 %v680_v6  ;;  %s266_s29 = scalar_lea.vmem [#allocation4], %s521_s24 }
  0x17   : > { %s273_s7 = scalar_lea.vmem %s815_s0, %s522_s30  ;;  %s280_s10 = scalar_lea.vmem %s816_s1, %s522_s30  ;;  %v369_v14 = vand.u32 127, %v368_v12 }
  0x18   : > { %v290_v0 = vld [vmem:[%s273_s7] sm:$0xf]  ;;  %s394_s30 = sshll.u32 %s266_s29, 4  ;;  %s392_s7 = scalar_lea.hbm %s819_s4, %s527_s26  ;;  %s395_s30 = int_to_ptr.vmem [resolvable:$true] %s394_s30 }
  0x19   : > { %v292_v1 = vld [vmem:[%s280_s10] sm:$0xf]  ;;  %291 = vst [vmem:[#allocation2] sm:$0xf] %v290_v0  ;;  %vm374_vm5 = vcmp.lt.s32.totalorder %v369_v14, 44  ;;  %s599_s9 = scalar_lea.vmem %s395_s30, 64 }
  0x1a   : > { %294 = vst.msk [vmem:[#allocation2 + $0x4] sm:$0xf] %vm293_vm0, %v292_v1  ;;  %p600_p12 = scmp.ne.s32.totalorder %s395_s30, %s599_s9  ;;  %s681_s10 = smov [#allocation4]  }
  0x1b   : > { %s603_s18 = sshll.u32 %s681_s10, 4  ;;  %s604_s18 = int_to_ptr.vmem [resolvable:$false] %s603_s18 }
  0x1c   : > { %p601_p13 = pnand %p600_p12, %p747_p4  ;;  %p606_p1 = scmp.lt.s32.totalorder %s395_s30, %s604_s18 }
  0x1e   : > { %p602_p0 = pneg %p601_p13 }
  0x20   : > { %v295_v4 = vld [vmem:[#allocation2] sm:$0xf] }
  0x21   : > { %v297_v3 = vld [vmem:[#allocation2] sm:$0xff]  ;;  %296 = vst [vmem:[#allocation3] sm:$0xf] %v295_v4 }
  0x22   : > { %299 = vrot.lane.b32.xlu0 %v297_v3, %s678_s11  ;;  %s605_s11 = scalar_lea.vmem %s604_s18, 128 }
  0x23   : > { %p607_p2 = scmp.lt.s32.totalorder %s605_s11, %s599_s9 }
  0x25   : > { %p608_p3 = por %p607_p2, %p606_p1 }
  0x26   : > { %312 = vperm.xlu0 %597, %v309_v5  }
  0x27   : > { %p609_p5 = pnand %p608_p3, %p602_p0 }
  0x94   : > { %v300_v7 = vpop.permute.xlu0 %299 }
  0x95   : > { %v301_v8 = vrot.slane %v300_v7, 4 }
  0x97   : > { %v303_v9 = vsel %vm302_vm2, %v300_v7, %v301_v8 }
  0x98   : > { %305 = vst [vmem:[#allocation3 + $0x4] sm:$0xf] %v303_v9 }
  0x9f   : > { %v598_v10 = vld [vmem:[#allocation3] sm:$0xff]  }
  0xa0   : > { %533 = vmatpush3.bf16.msra.mxu0 %v598_v10 }
  0xa1   : > { %v313_v13 = vpop.permute.xlu0 %312 }
  0xa3   : > { %535 = vmatmul.mubr.msk.bf16.vlgmr.msra.gmra.mxu0 %vm321_vm3, %v306_v11 }
 0x163   : > { %v359_v15 = vpop.f32.mrf.mxu0 }
 0x164   : > { %v360_v16 = vadd.f32 %v359_v15, %v313_v13 }
 0x165   : > { %v536_v17 = vpop.f32.mrf.mxu0 }
 0x166   : > { %vm365_vm4 = vcmp.ge.f32.partialorder %v360_v16, 0.0  ;;  %v366_v18 = vmul.f32 0.1, %v360_v16 }
 0x167   : > { %v362_v19 = vpop.f32.mrf.mxu0 }
 0x168   : > { %v367_v20 = vsel %vm365_vm4, %v360_v16, %v366_v18 }
 0x169   : > { %v537_v21 = vpop.f32.mrf.mxu0  ;;  %v375_v22 = vsel %vm374_vm5, %v367_v20, 0.0 }
 0x16a   : > { %v376_v23 = vpack.c.bf16 %v375_v22, %v375_v22 }
 0x16c   : > { %377 = vst [vmem:[%s266_s29] sm:$0xf] %v376_v23 }
 0x16d   : > { %612 = shalt.err (!%p609_p5)
}
 0x16e   : > { %s613_s12 = scalar_lea.hbm %s392_s7, 64  ;;  %s617_s21 = scalar_lea.hbm %s819_s4, 128 }
 0x16f   : > { %p614_p6 = scmp.ne.s32.totalorder %s392_s7, %s613_s12  ;;  %p618_p10 = scmp.lt.s32.totalorder %s392_s7, %s819_s4 }
 0x170   : > { %p619_p11 = scmp.lt.s32.totalorder %s617_s21, %s613_s12 }
 0x171   : > { %p615_p7 = pnand %p614_p6, %p747_p4 }
 0x172   : > { %p620_p12 = por %p619_p11, %p618_p10 }
 0x173   : > { %p616_p9 = pneg %p615_p7 }
 0x175   : > { %p621_p13 = pnand %p620_p12, %p616_p9 }
 0x177   : > { %624 = shalt.err (!%p621_p13)
}
 0x178   : > { %538 = dma.vmem_to_hbm [thread:$0]  (%p747_p4), %s395_s30, 64, %s392_s7, %s379_s8  }
 0x179 PF: > { %p544_p0 = scmp.ge.s32.totalorder %s675_s20, 2  ;;  %s406_s26 = sand.u32 1, %s655_s15  }
 0x17a   : > { %s407_s29 = scalar_lea.sflag [#allocation5], %s406_s26 }
 0x17b   : > { %p541_p1 = pnand %p544_p0, %p754_p8 }
 0x17d   : > { %p542_p2 = pneg %p541_p1 }
 0x17f   : > { %650 = dma.done.wait (%p542_p2), %s407_s29, 64  }
 0x180   : > { %652 = vsyncadd (%p542_p2), %s407_s29, 4294967232  ;;  %s17_s20 = sadd.s32 1, %s675_s20   ;;  %s822_s15 = smov %s659_s16 }
 0x181   : > { %p14_p3 = scmp.ge.s32.totalorder %s17_s20, 4   ;;  %s823_s16 = smov %s663_s17 }
 0x182   : > { %s824_s17 = smov %s760_s28  ;;  %s825_s18 = smov %s671_s19 }
 0x183   : > { %s826_s19 = smov %s828_s23  ;;  %16 = sbr.rel (!%p14_p3) target bundleno = 4 (0x4), region = 80 }
 0x188   :  { %412 = vsyncpa [#allocation5], 1 }
 0x189   :  { %414 = vsyncpa [#allocation5 + $0x1], 1 }

</bundles_post_ra>
